<compile_context>
chip_gen: v6e
topology: v6e:2x2x1
jax: 0.10.0
libtpu: 0.0.40
codegen_flags: <defaults>
</compile_context>

<pallas_src>
import functools

import jax
import jax.numpy as jnp
from jax.experimental import pallas as pl
from jax.experimental.pallas import tpu as pltpu

MID = 300        # logical hidden width of fc1/fc2 (PyTorch module)
MID_PAD = 384    # padded to a multiple of 128 lanes
HID = 128        # stream hidden width


def dueling_q_kernel(x_ref,
                     w1_ref, b1_ref,
                     w2_ref, b2_ref,
                     wva1_ref, bva1_ref,
                     wva2_ref, bva2_ref,
                     out_ref,
                     *, actual_b, action_size):
    compute_dtype = w1_ref.dtype  # bf16 (or f32 if requested)

    x = x_ref[...].astype(compute_dtype)

    # fc1 + ReLU  (K=state_size, N=384)
    h1 = jnp.dot(x, w1_ref[...], preferred_element_type=jnp.float32) + b1_ref[...]
    h1 = jnp.maximum(h1, 0.0)

    # fc2 + ReLU  (K=384, N=384); padded cols stay exactly 0.
    h2 = jnp.dot(h1.astype(compute_dtype), w2_ref[...],
                 preferred_element_type=jnp.float32) + b2_ref[...]
    h2 = jnp.maximum(h2, 0.0)

    # Fused first stream layer: [value_hidden | advantage_hidden]  (K=384, N=256)
    va1 = jnp.dot(h2.astype(compute_dtype), wva1_ref[...],
                  preferred_element_type=jnp.float32) + bva1_ref[...]
    va1 = jnp.maximum(va1, 0.0)

    # Fused second stream layer against a block-diagonal weight (K=256, N=A+1):
    #   cols 0:A  -> advantages, col A -> value.
    va2 = jnp.dot(va1.astype(compute_dtype), wva2_ref[...],
                  preferred_element_type=jnp.float32) + bva2_ref[...]
    advantages = va2[:, :action_size]          # (Bp, A)
    values = va2[:, action_size:action_size + 1]  # (Bp, 1)

    # Global scalar mean over the *real* batch rows only (matches torch
    # advantages.mean(); padded batch rows are excluded).
    bp = advantages.shape[0]
    row_ids = jax.lax.broadcasted_iota(jnp.int32, (bp, action_size), 0)
    adv_valid = jnp.where(row_ids < actual_b, advantages, 0.0)
    adv_mean = jnp.sum(adv_valid) * (1.0 / float(actual_b * action_size))

    out_ref[...] = values + (advantages - adv_mean)


def dueling_q_forward(state, params):
    """state: (B, state_size) f32. params: output of prepare_params()."""
    B, _ = state.shape
    A = params["b_va2"].shape[1] - 1

    # Pad batch to a sublane multiple (8); padded rows are masked in-kernel.
    Bp = ((B + 7) // 8) * 8
    if Bp != B:
        state = jnp.pad(state, ((0, Bp - B), (0, 0)))

    vmem = pl.BlockSpec(memory_space=pltpu.MemorySpace.VMEM)
    args = (
        state,
        params["w1"], params["b1"],
        params["w2"], params["b2"],
        params["w_va1"], params["b_va1"],
        params["w_va2"], params["b_va2"],
    )

    kernel = functools.partial(dueling_q_kernel, actual_b=B, action_size=A)
    out = pl.pallas_call(
        kernel,
        out_shape=jax.ShapeDtypeStruct((Bp, A), jnp.float32),
        in_specs=[vmem] * len(args),
        out_specs=vmem,
    )(*args)
    return out[:B]


def init_params(key, state_size, action_size):
    """Raw PyTorch-Linear-like params, stored transposed as (in, out), f32."""
    def linear(key, fan_in, fan_out):
        kw, kb = jax.random.split(key)
        bound = 1.0 / jnp.sqrt(fan_in)
        w = jax.random.uniform(kw, (fan_in, fan_out), jnp.float32, -bound, bound)
        b = jax.random.uniform(kb, (1, fan_out), jnp.float32, -bound, bound)
        return w, b

    keys = jax.random.split(key, 6)
    w1, b1 = linear(keys[0], state_size, MID)
    w2, b2 = linear(keys[1], MID, MID)
    wv1, bv1 = linear(keys[2], MID, HID)
    wv2, bv2 = linear(keys[3], HID, 1)
    wa1, ba1 = linear(keys[4], MID, HID)
    wa2, ba2 = linear(keys[5], HID, action_size)
    return dict(w1=w1, b1=b1, w2=w2, b2=b2,
                wv1=wv1, bv1=bv1, wv2=wv2, bv2=bv2,
                wa1=wa1, ba1=ba1, wa2=wa2, ba2=ba2)


def prepare_params(p, action_size, weights_dtype=jnp.bfloat16):
    """Pad hidden dims 300->384, fuse the two streams, cast weights to bf16.

    Zero padding + ReLU(0)=0 + block-diagonal second-layer weight keep the
    math exactly equal to the unfused, unpadded network (up to bf16 rounding
    of the weights/activations fed to the MXU).
    """
    f32 = jnp.float32

    def pad_to(w, rows, cols):
        return jnp.pad(w, ((0, rows - w.shape[0]), (0, cols - w.shape[1])))

    w1p = pad_to(p["w1"], p["w1"].shape[0], MID_PAD)         # (S, 384)
    b1p = pad_to(p["b1"], 1, MID_PAD)                        # (1, 384)
    w2p = pad_to(p["w2"], MID_PAD, MID_PAD)                  # (384, 384)
    b2p = pad_to(p["b2"], 1, MID_PAD)                        # (1, 384)

    # Fused stream layer 1: cols 0:128 -> value hidden, cols 128:256 -> adv hidden.
    wv1p = pad_to(p["wv1"], MID_PAD, HID)
    wa1p = pad_to(p["wa1"], MID_PAD, HID)
    w_va1 = jnp.concatenate([wv1p, wa1p], axis=1)            # (384, 256)
    b_va1 = jnp.concatenate([p["bv1"], p["ba1"]], axis=1)    # (1, 256)

    # Fused stream layer 2 (block-diagonal): cols 0:A advantages, col A value.
    A = action_size
    w_va2 = jnp.zeros((2 * HID, A + 1), f32)
    w_va2 = w_va2.at[HID:, :A].set(p["wa2"])                 # adv hidden -> advantages
    w_va2 = w_va2.at[:HID, A:].set(p["wv2"])                 # value hidden -> value
    b_va2 = jnp.concatenate([p["ba2"], p["bv2"]], axis=1)    # (1, A+1)

    wd = weights_dtype
    return dict(
        w1=w1p.astype(wd), b1=b1p.astype(f32),
        w2=w2p.astype(wd), b2=b2p.astype(f32),
        w_va1=w_va1.astype(wd), b_va1=b_va1.astype(f32),
        w_va2=w_va2.astype(wd), b_va2=b_va2.astype(f32),
    )


def reference_forward(state, p, weights_dtype=jnp.bfloat16):
    """Faithful unfused/unpadded reference (emulates the bf16 weight cast)."""
    def lin(x, w, b):
        return jnp.dot(x.astype(weights_dtype), w.astype(weights_dtype),
                       preferred_element_type=jnp.float32) + b

    relu = lambda z: jnp.maximum(z, 0.0)
    h = relu(lin(state, p["w1"], p["b1"]))
    h = relu(lin(h, p["w2"], p["b2"]))
    values = lin(relu(lin(h, p["wv1"], p["bv1"])), p["wv2"], p["bv2"])
    adv = lin(relu(lin(h, p["wa1"], p["ba1"])), p["wa2"], p["ba2"])
    return values + (adv - jnp.mean(adv))


if __name__ == "__main__":
    state_size = 16
    action_size = 4
    batch = 8  # small test shape; production callers should batch >= 256

    key = jax.random.PRNGKey(0)
    k_params, k_state = jax.random.split(key)
    raw_params = init_params(k_params, state_size, action_size)
    params = prepare_params(raw_params, action_size, weights_dtype=jnp.bfloat16)
    state = jax.random.normal(k_state, (batch, state_size), jnp.float32)

    q = dueling_q_forward(state, params)
    q = jax.block_until_ready(q)

    q_ref = reference_forward(state, raw_params, weights_dtype=jnp.bfloat16)
    assert q.shape == (batch, action_size)
    assert jnp.allclose(q, q_ref, atol=1e-3, rtol=1e-3), "mismatch vs reference"

    print("KERNEL_OK")
</pallas_src>

<mosaic_0001>
module attributes {stable_mosaic.version = 11 : i64} {
  func.func @dueling_q_kernel(%arg0: memref<8x16xf32, #tpu.memory_space<vmem>>, %arg1: memref<16x384xbf16, #tpu.memory_space<vmem>>, %arg2: memref<1x384xf32, #tpu.memory_space<vmem>>, %arg3: memref<384x384xbf16, #tpu.memory_space<vmem>>, %arg4: memref<1x384xf32, #tpu.memory_space<vmem>>, %arg5: memref<384x256xbf16, #tpu.memory_space<vmem>>, %arg6: memref<1x256xf32, #tpu.memory_space<vmem>>, %arg7: memref<256x5xbf16, #tpu.memory_space<vmem>>, %arg8: memref<1x5xf32, #tpu.memory_space<vmem>>, %arg9: memref<8x4xf32, #tpu.memory_space<vmem>>) attributes {dimension_semantics = [], scalar_prefetch = 0 : i64, scratch_operands = 0 : i64, tpu.core_type = #tpu.core_type<tc>} {
    %c0 = arith.constant 0 : index
    %c0_0 = arith.constant 0 : index
    %0 = vector.load %arg0[%c0, %c0_0] : memref<8x16xf32, #tpu.memory_space<vmem>>, vector<8x16xf32>
    %1 = arith.truncf %0 : vector<8x16xf32> to vector<8x16xbf16>
    %c0_1 = arith.constant 0 : index
    %c0_2 = arith.constant 0 : index
    %2 = vector.load %arg1[%c0_1, %c0_2] : memref<16x384xbf16, #tpu.memory_space<vmem>>, vector<16x384xbf16>
    %cst = arith.constant dense<0.000000e+00> : vector<8x384xf32>
    %3 = tpu.matmul %1, %2, %cst {dimension_numbers = #tpu.dot_dimension_numbers<[1], [0], [0], [1], [0, 0, 1, 1], [], []>} : vector<8x16xbf16>, vector<16x384xbf16>, vector<8x384xf32> -> vector<8x384xf32>
    %c0_3 = arith.constant 0 : index
    %c0_4 = arith.constant 0 : index
    %4 = vector.load %arg2[%c0_3, %c0_4] : memref<1x384xf32, #tpu.memory_space<vmem>>, vector<1x384xf32>
    %5 = vector.broadcast %4 : vector<1x384xf32> to vector<8x384xf32>
    %6 = arith.addf %3, %5 : vector<8x384xf32>
    %cst_5 = arith.constant 0.000000e+00 : f32
    %7 = vector.broadcast %cst_5 : f32 to vector<8x384xf32>
    %8 = arith.maximumf %6, %7 : vector<8x384xf32>
    %9 = arith.truncf %8 : vector<8x384xf32> to vector<8x384xbf16>
    %c0_6 = arith.constant 0 : index
    %c0_7 = arith.constant 0 : index
    %10 = vector.load %arg3[%c0_6, %c0_7] : memref<384x384xbf16, #tpu.memory_space<vmem>>, vector<384x384xbf16>
    %cst_8 = arith.constant dense<0.000000e+00> : vector<8x384xf32>
    %11 = tpu.matmul %9, %10, %cst_8 {dimension_numbers = #tpu.dot_dimension_numbers<[1], [0], [0], [1], [0, 0, 1, 1], [], []>} : vector<8x384xbf16>, vector<384x384xbf16>, vector<8x384xf32> -> vector<8x384xf32>
    %c0_9 = arith.constant 0 : index
    %c0_10 = arith.constant 0 : index
    %12 = vector.load %arg4[%c0_9, %c0_10] : memref<1x384xf32, #tpu.memory_space<vmem>>, vector<1x384xf32>
    %13 = vector.broadcast %12 : vector<1x384xf32> to vector<8x384xf32>
    %14 = arith.addf %11, %13 : vector<8x384xf32>
    %cst_11 = arith.constant 0.000000e+00 : f32
    %15 = vector.broadcast %cst_11 : f32 to vector<8x384xf32>
    %16 = arith.maximumf %14, %15 : vector<8x384xf32>
    %17 = arith.truncf %16 : vector<8x384xf32> to vector<8x384xbf16>
    %c0_12 = arith.constant 0 : index
    %c0_13 = arith.constant 0 : index
    %18 = vector.load %arg5[%c0_12, %c0_13] : memref<384x256xbf16, #tpu.memory_space<vmem>>, vector<384x256xbf16>
    %cst_14 = arith.constant dense<0.000000e+00> : vector<8x256xf32>
    %19 = tpu.matmul %17, %18, %cst_14 {dimension_numbers = #tpu.dot_dimension_numbers<[1], [0], [0], [1], [0, 0, 1, 1], [], []>} : vector<8x384xbf16>, vector<384x256xbf16>, vector<8x256xf32> -> vector<8x256xf32>
    %c0_15 = arith.constant 0 : index
    %c0_16 = arith.constant 0 : index
    %20 = vector.load %arg6[%c0_15, %c0_16] : memref<1x256xf32, #tpu.memory_space<vmem>>, vector<1x256xf32>
    %21 = vector.broadcast %20 : vector<1x256xf32> to vector<8x256xf32>
    %22 = arith.addf %19, %21 : vector<8x256xf32>
    %cst_17 = arith.constant 0.000000e+00 : f32
    %23 = vector.broadcast %cst_17 : f32 to vector<8x256xf32>
    %24 = arith.maximumf %22, %23 : vector<8x256xf32>
    %25 = arith.truncf %24 : vector<8x256xf32> to vector<8x256xbf16>
    %c0_18 = arith.constant 0 : index
    %c0_19 = arith.constant 0 : index
    %26 = vector.load %arg7[%c0_18, %c0_19] : memref<256x5xbf16, #tpu.memory_space<vmem>>, vector<256x5xbf16>
    %cst_20 = arith.constant dense<0.000000e+00> : vector<8x5xf32>
    %27 = tpu.matmul %25, %26, %cst_20 {dimension_numbers = #tpu.dot_dimension_numbers<[1], [0], [0], [1], [0, 0, 1, 1], [], []>} : vector<8x256xbf16>, vector<256x5xbf16>, vector<8x5xf32> -> vector<8x5xf32>
    %c0_21 = arith.constant 0 : index
    %c0_22 = arith.constant 0 : index
    %28 = vector.load %arg8[%c0_21, %c0_22] : memref<1x5xf32, #tpu.memory_space<vmem>>, vector<1x5xf32>
    %29 = vector.broadcast %28 : vector<1x5xf32> to vector<8x5xf32>
    %30 = arith.addf %27, %29 : vector<8x5xf32>
    %31 = vector.extract_strided_slice %30 {offsets = [0, 0], sizes = [8, 4], strides = [1, 1]} : vector<8x5xf32> to vector<8x4xf32>
    %32 = vector.extract_strided_slice %30 {offsets = [0, 4], sizes = [8, 1], strides = [1, 1]} : vector<8x5xf32> to vector<8x1xf32>
    %33 = tpu.iota {dimensions = array<i32: 0>} : vector<8x4xi32>
    %c8_i32 = arith.constant 8 : i32
    %34 = vector.broadcast %c8_i32 : i32 to vector<8x4xi32>
    %35 = arith.cmpi slt, %33, %34 : vector<8x4xi32>
    %cst_23 = arith.constant 0.000000e+00 : f32
    %36 = vector.broadcast %cst_23 : f32 to vector<8x4xf32>
    %37 = arith.select %35, %31, %36 : vector<8x4xi1>, vector<8x4xf32>
    %38 = vector.shape_cast %37 : vector<8x4xf32> to vector<1x8x4xf32>
    %cst_24 = arith.constant dense<0.000000e+00> : vector<1xf32>
    %39 = vector.multi_reduction <add>, %38, %cst_24 [1, 2] : vector<1x8x4xf32> to vector<1xf32>
    %40 = vector.shape_cast %39 : vector<1xf32> to vector<1x1x1xf32>
    %41 = vector.extract %40[0, 0, 0] : f32 from vector<1x1x1xf32>
    %cst_25 = arith.constant 3.125000e-02 : f32
    %42 = arith.mulf %41, %cst_25 : f32
    %43 = vector.broadcast %42 : f32 to vector<8x4xf32>
    %44 = arith.subf %31, %43 : vector<8x4xf32>
    %45 = vector.broadcast %32 : vector<8x1xf32> to vector<8x4xf32>
    %46 = arith.addf %45, %44 : vector<8x4xf32>
    %c0_26 = arith.constant 0 : index
    %c0_27 = arith.constant 0 : index
    %47 = vector.load %arg9[%c0_26, %c0_27] : memref<8x4xf32, #tpu.memory_space<vmem>>, vector<8x4xf32>
    tpu.vector_store %arg9[%c0_26, %c0_27], %46 {strides = array<i32>} : memref<8x4xf32, #tpu.memory_space<vmem>>, vector<8x4xf32>,
    return
  }
}

</mosaic_0001>

<bundles_post_ra>
// kernel: tpu_custom_call.1
= control target key start
LH: loop header
LB: loop body
LE: loop exit
PB: predicated region body
PF: predicated region fallthrough
CT: control target
= control target key end

     0   :  { %14 = vsyncpa [#allocation3], 0  ;;  %s2100_s0 = inlined_call_operand.vmem [shape: f32[8,16], index: 0, kind: input, shape index: {}]   ;;  %s2101_s1 = inlined_call_operand.vmem [shape: bf16[16,384], index: 1, kind: input, shape index: {}]   ;;  %s2102_s2 = inlined_call_operand.vmem [shape: f32[1,384], index: 2, kind: input, shape index: {}]   ;;  %s2103_s3 = inlined_call_operand.hbm [shape: bf16[384,384], index: 3, kind: input, shape index: {}]   ;;  %s2104_s4 = inlined_call_operand.vmem [shape: f32[1,384], index: 4, kind: input, shape index: {}]   ;;  %s2105_s5 = inlined_call_operand.hbm [shape: bf16[384,256], index: 5, kind: input, shape index: {}]   ;;  %s2106_s6 = inlined_call_operand.vmem [shape: f32[1,256], index: 6, kind: input, shape index: {}]   ;;  %s2107_s7 = inlined_call_operand.vmem [shape: bf16[256,5], index: 7, kind: input, shape index: {}]   ;;  %s2108_s8 = inlined_call_operand.vmem [shape: f32[1,5], index: 8, kind: input, shape index: {}]   ;;  %s2109_s9 = inlined_call_operand.vmem [shape: f32[8,4], index: 9, kind: output, shape index: {}]  }
   0x1   :  { %15 = vsyncpa [#allocation5], 0  ;;  %s1916_s30 = smov [#allocation2]  }
   0x2   :  { %s27_s10 = sshll.u32 %s1916_s30, 4  ;;  %s28_s10 = int_to_ptr.vmem [resolvable:$true] %s27_s10 }
   0x3   :  { %s1880_s11 = scalar_lea.vmem %s28_s10, 9216  ;;  %p1885_p1 = scmp.lt.s32.totalorder %s28_s10, %s28_s10 }
   0x4   :  { %p1881_p0 = scmp.ne.s32.totalorder %s28_s10, %s1880_s11  ;;  %p1886_p2 = scmp.lt.s32.totalorder %s1880_s11, %s1880_s11 }
   0x6   :  { %p1887_p3 = por %p1886_p2, %p1885_p1 }
   0x8   :  { %p1888_p4 = pnand %p1887_p3, %p1881_p0 }
   0xa   :  { %1891 = shalt.err (!%p1888_p4)
}
   0xb   :  { %s1917_s12 = smov 192   ;;  %s1918_s13 = smov 12  }
   0xc   :  { %33 = dma.hbm_to_vmem [thread:$0]  %s2103_s3, 9216, %s28_s10, [#allocation3], %s1917_s12, %s1917_s12, %s1918_s13  }
   0xd   :  { %s1919_s16 = smov [#allocation4]  }
   0xe   :  { %s41_s17 = sshll.u32 %s1919_s16, 4  ;;  %s42_s17 = int_to_ptr.vmem [resolvable:$true] %s41_s17 }
   0xf   :  { %s1900_s18 = scalar_lea.vmem %s42_s17, 6144  ;;  %p1905_p6 = scmp.lt.s32.totalorder %s42_s17, %s42_s17 }
  0x10   :  { %p1901_p5 = scmp.ne.s32.totalorder %s42_s17, %s1900_s18  ;;  %p1906_p7 = scmp.lt.s32.totalorder %s1900_s18, %s1900_s18 }
  0x12   :  { %p1907_p8 = por %p1906_p7, %p1905_p6 }
  0x14   :  { %p1908_p9 = pnand %p1907_p8, %p1901_p5 }
  0x16   :  { %1911 = shalt.err (!%p1908_p9)
}
  0x17   :  { %s1920_s19 = smov 128   ;;  %s1921_s20 = smov 8  }
  0x18   :  { %47 = dma.hbm_to_vmem [thread:$0]  %s2105_s5, 6144, %s42_s17, [#allocation5], %s1920_s19, %s1920_s19, %s1921_s20  }
  0x19   :  { %1912 = dma.done.wait [#allocation3], 9216  }
  0x1a   :  { %1913 = vsyncadd [#allocation3], 4294958080 }
  0x1b   :  { %1914 = dma.done.wait [#allocation5], 6144  }
  0x1c   :  { %1915 = vsyncadd [#allocation5], 4294961152  ;;  %v1922_v0 = vmov 0   ;;  %v1684_v1 = vld [vmem:[%s2101_s1 + $0x4] ss:$12 sps:$4 sm:$0xff]   ;;  %vm100_vm0 = vcmask 130048   ;;  %v69_v56 = vlaneseq }
  0x1d   :  { %136 = vmatprep.mubr.bf16.mxu1 %v1922_v0  ;;  %v1686_v2 = vld [vmem:[%s2101_s1] ss:$12 sps:$4 sm:$0xff]   ;;  %118 = vmatprep.subr.bf16.mxu1 %v1684_v1  ;;  %v1687_v5 = vld [vmem:[%s2101_s1 + $0x8] ss:$12 sps:$4 sm:$0xff]   ;;  %v1923_v8 = vmov 0.0   ;;  %vm1924_vm1 = vmmov 0  }
  0x1e   :  { %v61_v3 = vld [vmem:[%s2100_s0] sm:$0xff]  ;;  %119 = vmatpush1.bf16.msra.mxu1 %v1686_v2  ;;  %v1688_v6 = vld [vmem:[#allocation2 + $0xac] ss:$12 sps:$4 sm:$0xff]   ;;  %v1690_v7 = vld [vmem:[#allocation2 + $0xa8] ss:$12 sps:$4 sm:$0xff]   ;;  %v2002_v57 = vshrl.u32 %v69_v56, 7 }
  0x1f   :  { %v62_v4 = vpack.c.bf16 %v61_v3, %v61_v3  ;;  %1645 = vmatprep.subr.bf16.mxu1 %v1923_v8  ;;  %v1691_v9 = vld [vmem:[#allocation2 + $0x94] ss:$12 sps:$4 sm:$0xff]   ;;  %688 = vmatprep.subr.bf16.mxu0 %v1688_v6  ;;  %v1693_v10 = vld [vmem:[#allocation2 + $0x90] ss:$12 sps:$4 sm:$0xff]   ;;  %v1696_v12 = vld [vmem:[#allocation2 + $0x78] ss:$12 sps:$4 sm:$0xff]  }
  0x20   :  { %689 = vmatpush1.bf16.msra.mxu0 %v1690_v7  ;;  %v1694_v11 = vld [vmem:[#allocation2 + $0x7c] ss:$12 sps:$4 sm:$0xff]   ;;  %v1697_v13 = vld [vmem:[#allocation2 + $0x64] ss:$12 sps:$4 sm:$0xff]   ;;  %v1699_v14 = vld [vmem:[#allocation2 + $0x60] ss:$12 sps:$4 sm:$0xff]  }
  0x21   :  { %1451 = vmatmul.mubr.msk.bf16.vlgmr.msra.gmra.mxu1 %vm100_vm0, %v62_v4  ;;  %690 = vmatprep.subr.bf16.mxu0 %v1691_v9  ;;  %v1700_v15 = vld [vmem:[#allocation2 + $0x4c] ss:$12 sps:$4 sm:$0xff]   ;;  %v1718_v16 = vld [vmem:[#allocation2 + $0x228] ss:$12 sps:$4 sm:$0xff]   ;;  %v1724_v21 = vld [vmem:[#allocation2 + $0x210] ss:$12 sps:$4 sm:$0xff]  }
  0x22   :  { %1646 = vmatpush3.bf16.msra.mxu1 %v1687_v5  ;;  %1647 = vmatprep.mubr.msk.bf16.mxu1 %vm1924_vm1, %v1923_v8  ;;  %v1720_v17 = vld [vmem:[#allocation2 + $0x22c] ss:$12 sps:$4 sm:$0xff]   ;;  %v1702_v18 = vld [vmem:[#allocation2 + $0x48] ss:$12 sps:$4 sm:$0xff]   ;;  %v1705_v22 = vld [vmem:[#allocation2 + $0x30] ss:$12 sps:$4 sm:$0xff]  }
  0x23   :  { %v1703_v19 = vld [vmem:[#allocation2 + $0x34] ss:$12 sps:$4 sm:$0xff]   ;;  %729 = vmatprep.subr.bf16.mxu1 %v1720_v17  ;;  %v1732_v23 = vld [vmem:[#allocation2 + $0x1fc] ss:$12 sps:$4 sm:$0xff]   ;;  %v1730_v25 = vld [vmem:[#allocation2 + $0x1f8] ss:$12 sps:$4 sm:$0xff]  }
  0x24   :  { %691 = vmatpush1.bf16.msra.mxu0 %v1693_v10  ;;  %v1726_v20 = vld [vmem:[#allocation2 + $0x214] ss:$12 sps:$4 sm:$0xff]   ;;  %v1706_v24 = vld [vmem:[#allocation2 + $0x1c] ss:$12 sps:$4 sm:$0xff]   ;;  %v1738_v26 = vld [vmem:[#allocation2 + $0x1e4] ss:$12 sps:$4 sm:$0xff]  }
  0x25   :  { %692 = vmatprep.subr.bf16.mxu0 %v1694_v11  ;;  %v1708_v27 = vld [vmem:[#allocation2 + $0x18] ss:$12 sps:$4 sm:$0xff]   ;;  %v1736_v29 = vld [vmem:[#allocation2 + $0x1e0] ss:$12 sps:$4 sm:$0xff]   ;;  %v1742_v33 = vld [vmem:[#allocation2 + $0x1c8] ss:$12 sps:$4 sm:$0xff]  }
  0x26   :  { %v1709_v28 = vld [vmem:[#allocation2 + $0x4] ss:$12 sps:$4 sm:$0xff]   ;;  %v1711_v30 = vld [vmem:[#allocation2] ss:$12 sps:$4 sm:$0xff]   ;;  %v1714_v34 = vld [vmem:[#allocation2 + $0x168] ss:$12 sps:$4 sm:$0xff]  }
  0x27   :  { %v1744_v31 = vld [vmem:[#allocation2 + $0x1cc] ss:$12 sps:$4 sm:$0xff]   ;;  %v1715_v35 = vld [vmem:[#allocation2 + $0x154] ss:$12 sps:$4 sm:$0xff]   ;;  %v1717_v36 = vld [vmem:[#allocation2 + $0x150] ss:$12 sps:$4 sm:$0xff]  }
  0x28   :  { %693 = vmatpush1.bf16.msra.mxu0 %v1696_v12  ;;  %v1712_v32 = vld [vmem:[#allocation2 + $0x16c] ss:$12 sps:$4 sm:$0xff]   ;;  %v1721_v37 = vld [vmem:[#allocation2 + $0x13c] ss:$12 sps:$4 sm:$0xff]   ;;  %v1727_v39 = vld [vmem:[#allocation2 + $0x124] ss:$12 sps:$4 sm:$0xff]  }
  0x29   :  { %1648 = vmatmul.mubr.msk.bf16.vlgmr.msra.gmra.mxu1 %vm100_vm0, %v62_v4  ;;  %694 = vmatprep.subr.bf16.mxu0 %v1697_v13  ;;  %v1723_v38 = vld [vmem:[#allocation2 + $0x138] ss:$12 sps:$4 sm:$0xff]   ;;  %v1729_v40 = vld [vmem:[#allocation2 + $0x120] ss:$12 sps:$4 sm:$0xff]   ;;  %v1735_v42 = vld [vmem:[#allocation2 + $0x108] ss:$12 sps:$4 sm:$0xff]  }
  0x2a   :  { %761 = vmatprep.mubr.bf16.mxu1 %v1922_v0  ;;  %730 = vmatpush1.bf16.msra.mxu1 %v1718_v16  ;;  %v1733_v41 = vld [vmem:[#allocation2 + $0x10c] ss:$12 sps:$4 sm:$0xff]   ;;  %v1739_v43 = vld [vmem:[#allocation2 + $0xf4] ss:$12 sps:$4 sm:$0xff]   ;;  %v1741_v44 = vld [vmem:[#allocation2 + $0xf0] ss:$12 sps:$4 sm:$0xff]  }
  0x2b   :  { %731 = vmatprep.subr.bf16.mxu1 %v1726_v20  ;;  %v1745_v45 = vld [vmem:[#allocation2 + $0xdc] ss:$12 sps:$4 sm:$0xff]   ;;  %v1747_v46 = vld [vmem:[#allocation2 + $0xd8] ss:$12 sps:$4 sm:$0xff]   ;;  %v1750_v47 = vld [vmem:[#allocation2 + $0x1b4] ss:$12 sps:$4 sm:$0xff]  }
  0x2c   :  { %695 = vmatpush1.bf16.msra.mxu0 %v1699_v14  ;;  %v1748_v48 = vld [vmem:[#allocation2 + $0x1b0] ss:$12 sps:$4 sm:$0xff]   ;;  %v1753_v50 = vld [vmem:[#allocation2 + $0xc0] ss:$12 sps:$4 sm:$0xff]   ;;  %v1754_v52 = vld [vmem:[#allocation2 + $0x198] ss:$12 sps:$4 sm:$0xff]  }
  0x2d   :  { %696 = vmatprep.subr.bf16.mxu0 %v1700_v15  ;;  %v1751_v49 = vld [vmem:[#allocation2 + $0xc4] ss:$12 sps:$4 sm:$0xff]   ;;  %v1756_v51 = vld [vmem:[#allocation2 + $0x19c] ss:$12 sps:$4 sm:$0xff]   ;;  %v1757_v54 = vld [vmem:[#allocation2 + $0x180] ss:$12 sps:$4 sm:$0xff]  }
  0x2e   :  { %732 = vmatpush1.bf16.msra.mxu1 %v1724_v21  ;;  %v1759_v53 = vld [vmem:[#allocation2 + $0x184] ss:$12 sps:$4 sm:$0xff]   ;;  %v2005_v58 = vsub.s32 0, %v2002_v57  ;;  %v67_v59 = vld [vmem:[%s2102_s2] sm:$0x7]  ;;  %v2011_v60 = vsub.s32 1, %v2002_v57 }
  0x2f   :  { %733 = vmatprep.subr.bf16.mxu1 %v1732_v23  ;;  %v1761_v55 = vld [vmem:[#allocation2 + $0x170] ss:$12 sps:$4 sm:$0xff]   ;;  %v79_v2 = vsub.s32 2, %v2002_v57  ;;  %v1805_v56 = vld [vmem:[#allocation4] ss:$8 sps:$4 sm:$0xff]   ;;  %vm1421_vm2 = vcmask 31744  }
  0x30   :  { %697 = vmatpush1.bf16.msra.mxu0 %v1702_v18  ;;  %v72_v61 = vrot.slane %v67_v59, %v2005_v58  ;;  %v76_v62 = vrot.slane %v67_v59, %v2011_v60  ;;  %v1760_v12 = vld [vmem:[#allocation2 + $0x230] ss:$12 sps:$4 sm:$0xff]   ;;  %v1762_v18 = vld [vmem:[#allocation2 + $0x218] ss:$12 sps:$4 sm:$0xff]  }
  0x31   :  { %698 = vmatprep.subr.bf16.mxu0 %v1703_v19  ;;  %v80_v9 = vrot.slane %v67_v59, %v79_v2  ;;  %v1763_v20 = vld [vmem:[#allocation2 + $0xb0] ss:$12 sps:$4 sm:$0xff]  }
  0x32   :  { %734 = vmatpush1.bf16.msra.mxu1 %v1730_v25  ;;  %v1766_v25 = vld [vmem:[#allocation2 + $0x98] ss:$12 sps:$4 sm:$0xff]   ;;  %v1810_v59 = vld [vmem:[#allocation4 + $0xf4] ss:$8 sps:$4 sm:$0xff]  }
  0x33   :  { %735 = vmatprep.subr.bf16.mxu1 %v1738_v26  ;;  %v1767_v26 = vld [vmem:[#allocation2 + $0x140] ss:$12 sps:$4 sm:$0xff]   ;;  %v1858_v57 = vld [vmem:[%s2107_s7 + $0x70] sm:$0xff]  }
  0x34   :  { %699 = vmatpush1.bf16.msra.mxu0 %v1705_v22  ;;  %v1764_v22 = vld [vmem:[#allocation2 + $0x158] ss:$12 sps:$4 sm:$0xff]  }
  0x35   :  { %700 = vmatprep.subr.bf16.mxu0 %v1706_v24  ;;  %v1765_v24 = vld [vmem:[#allocation2 + $0x200] ss:$12 sps:$4 sm:$0xff]  }
  0x36   :  { %736 = vmatpush1.bf16.msra.mxu1 %v1736_v29  ;;  %v1770_v29 = vld [vmem:[#allocation2 + $0x128] ss:$12 sps:$4 sm:$0xff]  }
  0x37   :  { %737 = vmatprep.subr.bf16.mxu1 %v1744_v31  ;;  %v1772_v31 = vld [vmem:[#allocation2 + $0x68] ss:$12 sps:$4 sm:$0xff]  }
  0x38   :  { %701 = vmatpush1.bf16.msra.mxu0 %v1708_v27  ;;  %v1768_v27 = vld [vmem:[#allocation2 + $0x1e8] ss:$12 sps:$4 sm:$0xff]  }
  0x39   :  { %702 = vmatprep.subr.bf16.mxu0 %v1709_v28  ;;  %v1769_v28 = vld [vmem:[#allocation2 + $0x80] ss:$12 sps:$4 sm:$0xff]  }
  0x3a   :  { %738 = vmatpush1.bf16.msra.mxu1 %v1742_v33  ;;  %v1774_v33 = vld [vmem:[#allocation2 + $0x1b8] ss:$12 sps:$4 sm:$0xff]  }
  0x3b   :  { %739 = vmatprep.subr.bf16.mxu1 %v1750_v47  ;;  %v1790_v47 = vld [vmem:[#allocation4 + $0x50] ss:$8 sps:$4 sm:$0xff]  }
  0x3c   :  { %703 = vmatpush1.bf16.msra.mxu0 %v1711_v30  ;;  %v1771_v30 = vld [vmem:[#allocation2 + $0x1d0] ss:$12 sps:$4 sm:$0xff]  }
  0x3d   :  { %704 = vmatprep.subr.bf16.mxu0 %v1712_v32  ;;  %v1773_v32 = vld [vmem:[#allocation2 + $0x110] ss:$12 sps:$4 sm:$0xff]  }
  0x3e   :  { %740 = vmatpush1.bf16.msra.mxu1 %v1748_v48  ;;  %v1795_v48 = vld [vmem:[#allocation4 + $0x44] ss:$8 sps:$4 sm:$0xff]  }
  0x3f   :  { %741 = vmatprep.subr.bf16.mxu1 %v1756_v51  ;;  %v1801_v51 = vld [vmem:[#allocation4 + $0x24] ss:$8 sps:$4 sm:$0xff]  }
  0x40   :  { %705 = vmatpush2.bf16.msra.mxu0 %v1714_v34  ;;  %v1775_v34 = vld [vmem:[#allocation2 + $0x50] ss:$12 sps:$4 sm:$0xff]  }
  0x41   :  { %706 = vmatprep.subr.bf16.mxu0 %v1715_v35  ;;  %v1776_v35 = vld [vmem:[#allocation2 + $0xf8] ss:$12 sps:$4 sm:$0xff]  }
  0x42   :  { %742 = vmatpush1.bf16.msra.mxu1 %v1754_v52  ;;  %v1799_v52 = vld [vmem:[#allocation4 + $0x20] ss:$8 sps:$4 sm:$0xff]  }
  0x43   :  { %743 = vmatprep.subr.bf16.mxu1 %v1759_v53  ;;  %v1804_v53 = vld [vmem:[#allocation4 + $0x14] ss:$8 sps:$4 sm:$0xff]  }
  0x44   :  { %707 = vmatpush2.bf16.msra.mxu0 %v1717_v36  ;;  %v1777_v36 = vld [vmem:[#allocation2 + $0x1a0] ss:$12 sps:$4 sm:$0xff]  }
  0x45   :  { %708 = vmatprep.subr.bf16.mxu0 %v1721_v37  ;;  %v1778_v37 = vld [vmem:[#allocation2 + $0x38] ss:$12 sps:$4 sm:$0xff]  }
  0x46   :  { %744 = vmatpush1.bf16.msra.mxu1 %v1757_v54  ;;  %v1802_v54 = vld [vmem:[#allocation4 + $0x10] ss:$8 sps:$4 sm:$0xff]  }
  0x47   :  { %1592 = vmatprep.subr.bf16.mxu1 %v1761_v55  ;;  %v1807_v55 = vld [vmem:[#allocation4 + $0x4] ss:$8 sps:$4 sm:$0xff]  }
  0x48   :  { %709 = vmatpush2.bf16.msra.mxu0 %v1723_v38  ;;  %v1779_v38 = vld [vmem:[#allocation2 + $0xe0] ss:$12 sps:$4 sm:$0xff]  }
  0x49   :  { %710 = vmatprep.subr.bf16.mxu0 %v1727_v39  ;;  %v1780_v39 = vld [vmem:[#allocation2 + $0x188] ss:$12 sps:$4 sm:$0xff]  }
  0x4c   :  { %711 = vmatpush2.bf16.msra.mxu0 %v1729_v40  ;;  %v1781_v40 = vld [vmem:[#allocation2 + $0x20] ss:$12 sps:$4 sm:$0xff]  }
  0x4d   :  { %712 = vmatprep.subr.bf16.mxu0 %v1733_v41  ;;  %v1782_v41 = vld [vmem:[#allocation2 + $0xc8] ss:$12 sps:$4 sm:$0xff]  }
  0x50   :  { %713 = vmatpush2.bf16.msra.mxu0 %v1735_v42  ;;  %v1783_v42 = vld [vmem:[#allocation2 + $0x8] ss:$12 sps:$4 sm:$0xff]  }
  0x51   :  { %714 = vmatprep.subr.bf16.mxu0 %v1739_v43  ;;  %v1786_v43 = vld [vmem:[#allocation4 + $0x74] ss:$8 sps:$4 sm:$0xff]  }
  0x54   :  { %715 = vmatpush2.bf16.msra.mxu0 %v1741_v44  ;;  %v1784_v44 = vld [vmem:[#allocation4 + $0x70] ss:$8 sps:$4 sm:$0xff]  }
  0x55   :  { %716 = vmatprep.subr.bf16.mxu0 %v1745_v45  ;;  %v1789_v45 = vld [vmem:[#allocation4 + $0x64] ss:$8 sps:$4 sm:$0xff]  }
  0x58   :  { %717 = vmatpush2.bf16.msra.mxu0 %v1747_v46  ;;  %v1787_v46 = vld [vmem:[#allocation4 + $0x60] ss:$8 sps:$4 sm:$0xff]  }
  0x59   :  { %718 = vmatprep.subr.bf16.mxu0 %v1751_v49  ;;  %v1793_v49 = vld [vmem:[#allocation4 + $0x40] ss:$8 sps:$4 sm:$0xff]  }
  0x5c   :  { %719 = vmatpush2.bf16.msra.mxu0 %v1753_v50  ;;  %v1798_v50 = vld [vmem:[#allocation4 + $0x34] ss:$8 sps:$4 sm:$0xff]  }
  0x5d   :  { %1651 = vmatprep.subr.bf16.mxu0 %v1923_v8 }
  0xe1   :  { %v138_v63 = vpop.f32.mrf.mxu1 }
  0xe2   :  { %v139_v1 = vadd.f32 %v138_v63, %v72_v61  ;;  %v1808_v61 = vld [vmem:[#allocation4 + $0xf0] ss:$8 sps:$4 sm:$0xff]   ;;  %v1811_v63 = vld [vmem:[#allocation4 + $0xe0] ss:$8 sps:$4 sm:$0xff]  }
  0xe3   :  { %v140_v3 = vpop.f32.mrf.mxu1 }
  0xe4   :  { %v141_v4 = vadd.f32 %v140_v3, %v76_v62  ;;  %v185_v5 = vmax.f32 %v139_v1, 0.0  ;;  %v1813_v62 = vld [vmem:[#allocation4 + $0xe4] ss:$8 sps:$4 sm:$0xff]   ;;  %v1816_v1 = vld [vmem:[#allocation4 + $0xd4] ss:$8 sps:$4 sm:$0xff]  }
  0xe5   :  { %v142_v6 = vpop.f32.mrf.mxu1  ;;  %v1814_v3 = vld [vmem:[#allocation4 + $0xd0] ss:$8 sps:$4 sm:$0xff]  }
  0xe6   :  { %v186_v7 = vmax.f32 %v141_v4, 0.0  ;;  %v2018_v13 = vpack.c.bf16 %v185_v5, %v185_v5  ;;  %v1819_v4 = vld [vmem:[#allocation4 + $0xc4] ss:$8 sps:$4 sm:$0xff]   ;;  %v1817_v5 = vld [vmem:[#allocation4 + $0xc0] ss:$8 sps:$4 sm:$0xff]  }
  0xe7   :  { %v143_v10 = vpop.f32.mrf.mxu1  ;;  %v1822_v6 = vld [vmem:[#allocation4 + $0xb4] ss:$8 sps:$4 sm:$0xff]  }
  0xe8   :  { %v189_v11 = vpack.c.bf16 %v186_v7, %v186_v7  ;;  %v1832_v7 = vld [vmem:[#allocation4 + $0x170] ss:$8 sps:$4 sm:$0xff]   ;;  %v1837_v10 = vld [vmem:[#allocation4 + $0x164] ss:$8 sps:$4 sm:$0xff]  }
  0xe9   :  { %v179_v14 = vpop.f32.mrf.mxu1 }
  0xea   :  { %v180_v15 = vadd.f32 %v179_v14, %v80_v9  ;;  %720 = vmatprep.mubr.bf16.mxu0 %v189_v11  ;;  %v1834_v9 = vld [vmem:[#allocation4 + $0x174] ss:$8 sps:$4 sm:$0xff]  }
  0xeb   :  { %v1649_v16 = vpop.f32.mrf.mxu1  ;;  %721 = vmatmul.mubr.bf16.vlgmr.msra.gmra.mxu0 %v2018_v13  ;;  %v1840_v14 = vld [vmem:[#allocation4 + $0x154] ss:$8 sps:$4 sm:$0xff]  }
  0xec   :  { %v187_v17 = vmax.f32 %v180_v15, 0.0  ;;  %1652 = vmatpush3.bf16.msra.mxu0 %v1760_v12  ;;  %1667 = vmatprep.mubr.msk.bf16.mxu0 %vm1924_vm1, %v1923_v8  ;;  %v1835_v12 = vld [vmem:[#allocation4 + $0x160] ss:$8 sps:$4 sm:$0xff]   ;;  %v1838_v16 = vld [vmem:[#allocation4 + $0x150] ss:$8 sps:$4 sm:$0xff]  }
  0xed   :  { %v182_v19 = vpop.f32.mrf.mxu1  ;;  %1653 = vmatprep.subr.bf16.mxu0 %v1923_v8  ;;  %v1823_v15 = vld [vmem:[#allocation4 + $0xa0] ss:$8 sps:$4 sm:$0xff]  }
  0xee   :  { %v190_v21 = vpack.c.bf16 %v187_v17, %v187_v17  ;;  %v1828_v17 = vld [vmem:[#allocation4 + $0x94] ss:$8 sps:$4 sm:$0xff]   ;;  %v1826_v19 = vld [vmem:[#allocation4 + $0x90] ss:$8 sps:$4 sm:$0xff]  }
  0xef   :  { %v1650_v23 = vpop.f32.mrf.mxu1 }
  0xf0   :  { %1654 = vmatpush3.bf16.msra.mxu0 %v1762_v18  ;;  %762 = vmatmul.mubr.bf16.vlgmr.msra.gmra.mxu1 %v190_v21  ;;  %v1843_v18 = vld [vmem:[#allocation4 + $0x144] ss:$8 sps:$4 sm:$0xff]   ;;  %v1846_v23 = vld [vmem:[#allocation4 + $0x134] ss:$8 sps:$4 sm:$0xff]  }
  0xf1   :  { %1593 = vmatpush3.bf16.msra.mxu1 %v1763_v20  ;;  %802 = vmatprep.mubr.bf16.mxu1 %v189_v11  ;;  %v1820_v11 = vld [vmem:[#allocation4 + $0xb0] ss:$8 sps:$4 sm:$0xff]   ;;  %v1841_v20 = vld [vmem:[#allocation4 + $0x140] ss:$8 sps:$4 sm:$0xff]  }
  0xf2   :  { %1655 = vmatprep.subr.bf16.mxu0 %v1923_v8  ;;  %1594 = vmatprep.subr.bf16.mxu1 %v1764_v22  ;;  %v1829_v22 = vld [vmem:[#allocation4 + $0x80] ss:$8 sps:$4 sm:$0xff]  }
  0xf4   :  { %1656 = vmatpush3.bf16.msra.mxu0 %v1765_v24  ;;  %v1844_v24 = vld [vmem:[#allocation4 + $0x130] ss:$8 sps:$4 sm:$0xff]  }
  0xf5   :  { %1595 = vmatpush3.bf16.msra.mxu1 %v1766_v25  ;;  %1657 = vmatprep.subr.bf16.mxu0 %v1923_v8  ;;  %v1849_v25 = vld [vmem:[#allocation4 + $0x124] ss:$8 sps:$4 sm:$0xff]  }
  0xf6   :  { %1596 = vmatprep.subr.bf16.mxu1 %v1767_v26  ;;  %v1847_v26 = vld [vmem:[#allocation4 + $0x120] ss:$8 sps:$4 sm:$0xff]  }
  0xf8   :  { %1658 = vmatpush3.bf16.msra.mxu0 %v1768_v27  ;;  %v1852_v27 = vld [vmem:[#allocation4 + $0x114] ss:$8 sps:$4 sm:$0xff]  }
  0xf9   :  { %1597 = vmatpush3.bf16.msra.mxu1 %v1769_v28  ;;  %1659 = vmatprep.subr.bf16.mxu0 %v1923_v8  ;;  %v1850_v28 = vld [vmem:[#allocation4 + $0x110] ss:$8 sps:$4 sm:$0xff]  }
  0xfa   :  { %1598 = vmatprep.subr.bf16.mxu1 %v1770_v29  ;;  %v1855_v29 = vld [vmem:[#allocation4 + $0x104] ss:$8 sps:$4 sm:$0xff]  }
  0xfc   :  { %1660 = vmatpush3.bf16.msra.mxu0 %v1771_v30  ;;  %v1853_v30 = vld [vmem:[#allocation4 + $0x100] ss:$8 sps:$4 sm:$0xff]  }
  0xfd   :  { %1599 = vmatpush3.bf16.msra.mxu1 %v1772_v31  ;;  %1661 = vmatprep.subr.bf16.mxu0 %v1923_v8  ;;  %v287_v31 = vld [vmem:[%s2104_s4] sm:$0x7] }
  0xfe   :  { %1600 = vmatprep.subr.bf16.mxu1 %v1773_v32  ;;  %v292_v32 = vrot.slane %v287_v31, %v2005_v58 }
 0x100   :  { %1662 = vmatpush3.bf16.msra.mxu0 %v1774_v33 }
 0x101   :  { %1601 = vmatpush3.bf16.msra.mxu1 %v1775_v34  ;;  %1663 = vmatprep.subr.bf16.mxu0 %v1923_v8  ;;  %v296_v34 = vrot.slane %v287_v31, %v2011_v60 }
 0x102   :  { %1602 = vmatprep.subr.bf16.mxu1 %v1776_v35 }
 0x104   :  { %1664 = vmatpush3.bf16.msra.mxu0 %v1777_v36 }
 0x105   :  { %1603 = vmatpush3.bf16.msra.mxu1 %v1778_v37  ;;  %1665 = vmatprep.subr.bf16.mxu0 %v1923_v8  ;;  %v1792_v8 = vld [vmem:[#allocation4 + $0x54] ss:$8 sps:$4 sm:$0xff]  }
 0x106   :  { %1604 = vmatprep.subr.bf16.mxu1 %v1779_v38 }
 0x108   :  { %1666 = vmatpush3.bf16.msra.mxu0 %v1780_v39 }
 0x109   :  { %1605 = vmatpush3.bf16.msra.mxu1 %v1781_v40  ;;  %1197 = vmatprep.subr.bf16.mxu0 %v1834_v9  ;;  %v1863_v9 = vld [vmem:[%s2107_s7 + $0x20] sm:$0xff]  }
 0x10a   :  { %1606 = vmatprep.subr.bf16.mxu1 %v1782_v41 }
 0x10b   :  { %1668 = vmatmul.mubr.bf16.vlgmr.msra.gmra.mxu0 %v190_v21  ;;  %v1831_v21 = vld [vmem:[#allocation4 + $0x84] ss:$8 sps:$4 sm:$0xff]  }
 0x10c   :  { %1229 = vmatprep.mubr.bf16.mxu0 %v1922_v0  ;;  %v1796_v0 = vld [vmem:[#allocation4 + $0x30] ss:$8 sps:$4 sm:$0xff]   ;;  %1198 = vmatpush1.bf16.msra.mxu0 %v1832_v7  ;;  %v1862_v7 = vld [vmem:[%s2107_s7 + $0x60] sm:$0xff]  }
 0x10d   :  { %1607 = vmatpush3.bf16.msra.mxu1 %v1783_v42  ;;  %1199 = vmatprep.subr.bf16.mxu0 %v1837_v10  ;;  %v1864_v10 = vld [vmem:[%s2107_s7 + $0x58] sm:$0xff]  }
 0x10e   :  { %1156 = vmatprep.subr.bf16.mxu1 %v1786_v43 }
 0x110   :  { %803 = vmatmul.mubr.bf16.vlgmr.msra.gmra.mxu1 %v2018_v13  ;;  %v1825_v13 = vld [vmem:[#allocation4 + $0xa4] ss:$8 sps:$4 sm:$0xff]   ;;  %1200 = vmatpush1.bf16.msra.mxu0 %v1835_v12  ;;  %v1866_v12 = vld [vmem:[%s2107_s7 + $0x50] sm:$0xff]  }
 0x111   :  { %1157 = vmatpush1.bf16.msra.mxu1 %v1784_v44  ;;  %1201 = vmatprep.subr.bf16.mxu0 %v1840_v14  ;;  %v1868_v14 = vld [vmem:[%s2107_s7 + $0x48] sm:$0xff]  }
 0x112   :  { %1158 = vmatprep.subr.bf16.mxu1 %v1789_v45 }
 0x114   :  { %1202 = vmatpush1.bf16.msra.mxu0 %v1838_v16  ;;  %v1870_v16 = vld [vmem:[%s2107_s7 + $0x40] sm:$0xff]  }
 0x115   :  { %1159 = vmatpush1.bf16.msra.mxu1 %v1787_v46  ;;  %1203 = vmatprep.subr.bf16.mxu0 %v1843_v18 }
 0x116   :  { %1160 = vmatprep.subr.bf16.mxu1 %v1792_v8 }
 0x118   :  { %1204 = vmatpush1.bf16.msra.mxu0 %v1841_v20 }
 0x119   :  { %1161 = vmatpush1.bf16.msra.mxu1 %v1790_v47  ;;  %1205 = vmatprep.subr.bf16.mxu0 %v1846_v23 }
 0x11a   :  { %1162 = vmatprep.subr.bf16.mxu1 %v1795_v48 }
 0x11c   :  { %1206 = vmatpush1.bf16.msra.mxu0 %v1844_v24 }
 0x11d   :  { %1163 = vmatpush1.bf16.msra.mxu1 %v1793_v49  ;;  %1207 = vmatprep.subr.bf16.mxu0 %v1849_v25 }
 0x11e   :  { %1164 = vmatprep.subr.bf16.mxu1 %v1798_v50 }
 0x120   :  { %1208 = vmatpush1.bf16.msra.mxu0 %v1847_v26 }
 0x121   :  { %1165 = vmatpush1.bf16.msra.mxu1 %v1796_v0  ;;  %1209 = vmatprep.subr.bf16.mxu0 %v1852_v27 }
 0x122   :  { %1166 = vmatprep.subr.bf16.mxu1 %v1801_v51 }
 0x124   :  { %1210 = vmatpush1.bf16.msra.mxu0 %v1850_v28 }
 0x125   :  { %1167 = vmatpush1.bf16.msra.mxu1 %v1799_v52  ;;  %1211 = vmatprep.subr.bf16.mxu0 %v1855_v29 }
 0x126   :  { %1168 = vmatprep.subr.bf16.mxu1 %v1804_v53  ;;  %v300_v53 = vrot.slane %v287_v31, %v79_v2  ;;  %v1859_v2 = vld [vmem:[%s2107_s7 + $0x30] sm:$0xff]  }
 0x128   :  { %1212 = vmatpush1.bf16.msra.mxu0 %v1853_v30 }
 0x129   :  { %1169 = vmatpush1.bf16.msra.mxu1 %v1802_v54 }
 0x12a   :  { %1170 = vmatprep.subr.bf16.mxu1 %v1807_v55 }
 0x12d   :  { %1171 = vmatpush1.bf16.msra.mxu1 %v1805_v56 }
 0x12e   :  { %1172 = vmatprep.subr.bf16.mxu1 %v1810_v59 }
 0x131   :  { %1173 = vmatpush2.bf16.msra.mxu1 %v1808_v61 }
 0x132   :  { %1174 = vmatprep.subr.bf16.mxu1 %v1813_v62 }
 0x135   :  { %1175 = vmatpush2.bf16.msra.mxu1 %v1811_v63 }
 0x136   :  { %1176 = vmatprep.subr.bf16.mxu1 %v1816_v1 }
 0x139   :  { %1177 = vmatpush2.bf16.msra.mxu1 %v1814_v3  ;;  %v1856_v3 = vld [vmem:[%s2107_s7 + $0x78] sm:$0xff]  }
 0x13a   :  { %1178 = vmatprep.subr.bf16.mxu1 %v1819_v4  ;;  %v1857_v4 = vld [vmem:[%s2107_s7 + $0x38] sm:$0xff]   ;;  %1623 = vmatprep.subr.bf16.mxu0 %v1856_v3 }
 0x13d   :  { %1179 = vmatpush2.bf16.msra.mxu1 %v1817_v5  ;;  %v1860_v5 = vld [vmem:[%s2107_s7 + $0x68] sm:$0xff]  }
 0x13e   :  { %1180 = vmatprep.subr.bf16.mxu1 %v1822_v6  ;;  %v1861_v6 = vld [vmem:[%s2107_s7 + $0x28] sm:$0xff]  }
 0x141   :  { %1181 = vmatpush2.bf16.msra.mxu1 %v1820_v11  ;;  %v1865_v11 = vld [vmem:[%s2107_s7 + $0x18] sm:$0xff]  }
 0x142   :  { %1182 = vmatprep.subr.bf16.mxu1 %v1825_v13  ;;  %v1867_v13 = vld [vmem:[%s2107_s7 + $0x10] sm:$0xff]  }
 0x145   :  { %1183 = vmatpush2.bf16.msra.mxu1 %v1823_v15  ;;  %v1869_v15 = vld [vmem:[%s2107_s7 + $0x8] sm:$0xff]  }
 0x146   :  { %1184 = vmatprep.subr.bf16.mxu1 %v1828_v17  ;;  %v1871_v17 = vld [vmem:[%s2107_s7] sm:$0xff]  }
 0x149   :  { %1185 = vmatpush2.bf16.msra.mxu1 %v1826_v19 }
 0x14a   :  { %1186 = vmatprep.subr.bf16.mxu1 %v1831_v21 }
 0x14d   :  { %1187 = vmatpush2.bf16.msra.mxu1 %v1829_v22  ;;  %v904_v22 = vld [vmem:[%s2106_s6] sm:$0x3] }
 0x14e   :  { %v909_v23 = vrot.slane %v904_v22, %v2005_v58  ;;  %v913_v24 = vrot.slane %v904_v22, %v2011_v60  ;;  %v1573_v58 = vld [vmem:[%s2108_s8] ss:$0 sm:$0xff] }
 0x1ab   :  { %v722_v33 = vpop.f32.mrf.mxu0 }
 0x1ac   :  { %v723_v36 = vadd.f32 %v722_v33, %v292_v32 }
 0x1ad   :  { %v724_v35 = vpop.f32.mrf.mxu0 }
 0x1ae   :  { %v725_v39 = vadd.f32 %v724_v35, %v296_v34 }
 0x1af   :  { %v726_v37 = vpop.f32.mrf.mxu0 }
 0x1b0   :  { %v763_v38 = vpop.f32.mrf.mxu1  ;;  %v1925_v37 = vmov 4  }
 0x1b1   :  { %v764_v40 = vadd.f32 %v763_v38, %v723_v36  ;;  %v727_v41 = vpop.f32.mrf.mxu0  ;;  %1683 = vset.pattern.permute.xlu0 %v1925_v37 }
 0x1b2   :  { %v765_v42 = vpop.f32.mrf.mxu1 }
 0x1b3   :  { %v766_v43 = vadd.f32 %v765_v42, %v725_v39  ;;  %v850_v44 = vmax.f32 %v764_v40, 0.0 }
 0x1b4   :  { %v767_v45 = vpop.f32.mrf.mxu1 }
 0x1b5   :  { %v851_v46 = vmax.f32 %v766_v43, 0.0  ;;  %v853_v48 = vpack.c.bf16 %v850_v44, %v850_v44 }
 0x1b6   :  { %v768_v8 = vpop.f32.mrf.mxu1 }
 0x1b7   :  { %v854_v47 = vpack.c.bf16 %v851_v46, %v851_v46 }
 0x1b9   :  { %1188 = vmatprep.mubr.bf16.mxu1 %v854_v47 }
 0x1ba   :  { %1189 = vmatmul.mubr.bf16.vlgmr.msra.gmra.mxu1 %v853_v48 }
 0x1cb   :  { %v844_v49 = vpop.f32.mrf.mxu0 }
 0x1cd   :  { %v1669_v50 = vpop.f32.mrf.mxu0 }
 0x1cf   :  { %v847_v0 = vpop.f32.mrf.mxu0 }
 0x1d0   :  { %v1608_v51 = vpop.f32.mrf.mxu1 }
 0x1d1   :  { %v1670_v52 = vpop.f32.mrf.mxu0 }
 0x1d2   :  { %v1609_v54 = vpop.f32.mrf.mxu1 }
 0x1d3   :  { %v1610_v55 = vadd.f32 %v1609_v54, %v1608_v51 }
 0x1d4   :  { %v1611_v56 = vpop.f32.mrf.mxu1 }
 0x1d5   :  { %v805_v59 = vadd.f32 %v1610_v55, %v300_v53 }
 0x1d6   :  { %v1612_v61 = vpop.f32.mrf.mxu1 }
 0x1d7   :  { %v845_v62 = vadd.f32 %v844_v49, %v805_v59 }
 0x1d9   :  { %v852_v63 = vmax.f32 %v845_v62, 0.0 }
 0x1db   :  { %v855_v1 = vpack.c.bf16 %v852_v63, %v852_v63 }
 0x1dd   :  { %1230 = vmatmul.mubr.bf16.vlgmr.msra.gmra.mxu0 %v855_v1 }
 0x1de   :  { %1624 = vmatpush3.bf16.msra.mxu0 %v1857_v4 }
 0x1df   :  { %1625 = vmatprep.subr.bf16.mxu0 %v1858_v57 }
 0x1e2   :  { %1626 = vmatpush3.bf16.msra.mxu0 %v1859_v2 }
 0x1e3   :  { %1627 = vmatprep.subr.bf16.mxu0 %v1860_v5 }
 0x1e6   :  { %1628 = vmatpush3.bf16.msra.mxu0 %v1861_v6 }
 0x1e7   :  { %1629 = vmatprep.subr.bf16.mxu0 %v1862_v7 }
 0x1ea   :  { %1630 = vmatpush3.bf16.msra.mxu0 %v1863_v9 }
 0x1eb   :  { %1631 = vmatprep.subr.bf16.mxu0 %v1864_v10 }
 0x1ee   :  { %1632 = vmatpush3.bf16.msra.mxu0 %v1865_v11 }
 0x1ef   :  { %1633 = vmatprep.subr.bf16.mxu0 %v1866_v12 }
 0x1f2   :  { %1634 = vmatpush3.bf16.msra.mxu0 %v1867_v13 }
 0x1f3   :  { %1635 = vmatprep.subr.bf16.mxu0 %v1868_v14 }
 0x1f6   :  { %1636 = vmatpush3.bf16.msra.mxu0 %v1869_v15 }
 0x1f7   :  { %1637 = vmatprep.subr.bf16.mxu0 %v1870_v16 }
 0x1fa   :  { %1638 = vmatpush3.bf16.msra.mxu0 %v1871_v17 }
 0x27a   :  { %v1190_v18 = vpop.f32.mrf.mxu1 }
 0x27b   :  { %v1191_v25 = vadd.f32 %v1190_v18, %v909_v23 }
 0x27c   :  { %v1192_v19 = vpop.f32.mrf.mxu1 }
 0x27d   :  { %v1193_v27 = vadd.f32 %v1192_v19, %v913_v24 }
 0x27e   :  { %v1194_v20 = vpop.f32.mrf.mxu1 }
 0x280   :  { %v1195_v21 = vpop.f32.mrf.mxu1 }
 0x29d   :  { %v1231_v26 = vpop.f32.mrf.mxu0 }
 0x29e   :  { %v1232_v28 = vadd.f32 %v1231_v26, %v1191_v25 }
 0x29f   :  { %v1233_v29 = vpop.f32.mrf.mxu0 }
 0x2a0   :  { %v1234_v30 = vadd.f32 %v1233_v29, %v1193_v27  ;;  %v1238_v31 = vmax.f32 %v1232_v28, 0.0 }
 0x2a1   :  { %v1235_v32 = vpop.f32.mrf.mxu0 }
 0x2a2   :  { %v1239_v33 = vmax.f32 %v1234_v30, 0.0  ;;  %v1240_v36 = vpack.c.bf16 %v1238_v31, %v1238_v31 }
 0x2a3   :  { %v1236_v34 = vpop.f32.mrf.mxu0 }
 0x2a4   :  { %v1241_v35 = vpack.c.bf16 %v1239_v33, %v1239_v33 }
 0x2a6   :  { %1409 = vmatprep.mubr.bf16.mxu0 %v1241_v35 }
 0x2a7   :  { %1410 = vmatmul.mubr.bf16.vlgmr.msra.gmra.mxu0 %v1240_v36 }
 0x367   :  { %v1639_v38 = vpop.f32.mrf.mxu0 }
 0x369   :  { %v1640_v60 = vpop.f32.mrf.mxu0 }
 0x36a   :  { %v1641_v39 = vadd.f32 %v1640_v60, %v1639_v38 }
 0x36b   :  { %v1642_v40 = vpop.f32.mrf.mxu0 }
 0x36c   :  { %v1412_v41 = vadd.f32 %v1641_v39, %v1573_v58 }
 0x36d   :  { %v1643_v42 = vpop.f32.mrf.mxu0 }
 0x36e   :  { %v1422_v43 = vsel %vm1421_vm2, %v1412_v41, 0.0 }
 0x36f   :  { %1423 = vadd.xlane.f32.xlu0 %v1422_v43 }
 0x385   :  { %1437 = vperm.xlu0 %1683, %v1412_v41  }
 0x3f8   :  { %v1424_v44 = vpop.xlane.xlu0 %1423 }
 0x3f9   :  { %v1425_v45 = vrot.slane %v1424_v44, 4 }
 0x3fb   :  { %v1426_v46 = vadd.f32 %v1425_v45, %v1424_v44 }
 0x3fd   :  { %v1427_v8 = vrot.slane %v1426_v46, 2 }
 0x3ff   :  { %v1428_v47 = vadd.f32 %v1427_v8, %v1426_v46 }
 0x400   :  { %v1438_v51 = vpop.permute.xlu0 %1437 }
 0x401   :  { %v1429_v48 = vrot.slane %v1428_v47, 1 }
 0x403   :  { %v1430_v49 = vadd.f32 %v1429_v48, %v1428_v47 }
 0x405   :  { %1671 = vpush %v1430_v49 }
 0x436   :  { %s1672_s15 = spop %1671 }
 0x437   :  { %s1432_s8 = smul.f32 0.03125, %s1672_s15 }
 0x439   :  { %v1433_v50 = vstv %s1432_s8 }
 0x43a   :  { %v1434_v0 = vsub.f32 %v1412_v41, %v1433_v50 }
 0x43c   :  { %v1440_v52 = vadd.f32 %v1438_v51, %v1434_v0 }
 0x43e   :  { %1441 = vst.msk [vmem:[%s2109_s9] sm:$0xff] %vm1421_vm2, %v1440_v52 }
 0x43f   :  { %1446 = vsyncpa [#allocation3], 1 }
 0x440   :  { %1447 = vsyncpa [#allocation5], 1 }

</bundles_post_ra>
